<compile_context>
chip_gen: v6e
topology: v6e:2x2x1
jax: 0.10.0
libtpu: 0.0.40
codegen_flags: <defaults>
</compile_context>

<pallas_src>
import jax
import jax.numpy as jnp
from jax import lax
from jax.experimental import pallas as pl
from jax.experimental.pallas import tpu as pltpu


def _round_up(x, m):
    return ((x + m - 1) // m) * m


def dino_head_kernel(x_ref, w_ref, b_ref, o_ref, acc_ref):
    k = pl.program_id(2)

    @pl.when(k == 0)
    def _():
        acc_ref[...] = jnp.zeros_like(acc_ref)

    # ReLU in f32 on the VPU, then cast to bf16 for full MXU throughput.
    x = jnp.maximum(x_ref[...], 0.0).astype(jnp.bfloat16)      # [tm, tk]
    w = w_ref[...].astype(jnp.bfloat16)                         # [tn, tk] (PyTorch layout)

    # Contract the K axis of both operands (== x @ w.T), accumulate in f32.
    acc_ref[...] += lax.dot_general(
        x, w,
        dimension_numbers=(((1,), (1,)), ((), ())),
        preferred_element_type=jnp.float32,
    )

    @pl.when(k == pl.num_programs(2) - 1)
    def _():
        # Bias added exactly once, after the K accumulation is complete.
        o_ref[...] = (acc_ref[...] + b_ref[...]).astype(o_ref.dtype)


def dino_head(x, weight, bias, *, tm=None, tn=None, tk=None,
              out_dtype=jnp.float32):
    """relu(x) @ weight.T + bias, PyTorch nn.Linear semantics."""
    B, K = x.shape
    N, K2 = weight.shape
    assert K == K2 and bias.shape == (N,)

    # Tile sizes: sublane-aligned M, lane-dense (128-multiple) N and K.
    # Defaults stay well under v7x's 64 MiB VMEM with double buffering
    # (x: 2*tm*tk*4, W: 2*tn*tk*4, out: 2*tm*tn*4, acc: tm*tn*4 -> ~13 MiB).
    tm = tm if tm is not None else min(_round_up(B, 8), 256)
    tn = tn if tn is not None else min(_round_up(N, 128), 1024)
    tk = tk if tk is not None else min(_round_up(K, 128), 1024)

    Mp, Kp, Np = _round_up(B, tm), _round_up(K, tk), _round_up(N, tn)

    # Zero-padding is exact: relu(0)=0 and zero columns contribute nothing to the dot.
    xp = x if (Mp == B and Kp == K) else jnp.pad(x, ((0, Mp - B), (0, Kp - K)))
    wp = weight if (Np == N and Kp == K) else jnp.pad(weight, ((0, Np - N), (0, Kp - K)))
    bp = (bias if Np == N else jnp.pad(bias, (0, Np - N))).reshape(1, Np)

    grid = (Mp // tm, Np // tn, Kp // tk)

    flops = 2 * Mp * Np * Kp
    bytes_accessed = (xp.size * xp.dtype.itemsize
                      + wp.size * wp.dtype.itemsize
                      + bp.size * bp.dtype.itemsize
                      + Mp * Np * jnp.dtype(out_dtype).itemsize)

    out = pl.pallas_call(
        dino_head_kernel,
        out_shape=jax.ShapeDtypeStruct((Mp, Np), out_dtype),
        grid_spec=pltpu.PrefetchScalarGridSpec(
            num_scalar_prefetch=0,
            grid=grid,
            in_specs=[
                pl.BlockSpec((tm, tk), lambda i, j, k: (i, k)),   # x tile
                pl.BlockSpec((tn, tk), lambda i, j, k: (j, k)),   # W tile (out_dim, in_dim)
                pl.BlockSpec((1, tn), lambda i, j, k: (0, j)),    # bias tile
            ],
            out_specs=pl.BlockSpec((tm, tn), lambda i, j, k: (i, j)),
            scratch_shapes=[pltpu.VMEM((tm, tn), jnp.float32)],
        ),
        compiler_params=pltpu.CompilerParams(
            dimension_semantics=("parallel", "parallel", "arbitrary"),
            vmem_limit_bytes=48 * 1024 * 1024,  # safe on v7x (64 MiB physical)
        ),
        cost_estimate=pl.CostEstimate(
            flops=flops, transcendentals=0, bytes_accessed=bytes_accessed),
    )(xp, wp, bp)

    if Mp != B or Np != N:
        out = out[:B, :N]
    return out


def _reference(x, weight, bias):
    # Same math as the kernel (bf16 operands, f32 accumulation) for a tight check.
    x_b = jnp.maximum(x, 0.0).astype(jnp.bfloat16)
    w_b = weight.astype(jnp.bfloat16)
    return jnp.dot(x_b, w_b.T, preferred_element_type=jnp.float32) + bias


if __name__ == "__main__":
    key = jax.random.PRNGKey(0)

    # --- Case 1: small multi-tile problem (exercises K accumulation + finalize).
    B, in_dim, out_dim = 16, 256, 384
    kx, kw, kb, key = jax.random.split(key, 4)
    bound = 1.0 / (in_dim ** 0.5)
    x = jax.random.normal(kx, (B, in_dim), dtype=jnp.float32)
    weight = jax.random.uniform(kw, (out_dim, in_dim), jnp.float32, -bound, bound)
    bias = jax.random.uniform(kb, (out_dim,), jnp.float32, -bound, bound)

    out = dino_head(x, weight, bias, tm=8, tn=128, tk=128)   # grid = (2, 3, 2)
    out = jax.block_until_ready(out)
    ref = _reference(x, weight, bias)
    assert out.shape == (B, out_dim)
    assert jnp.allclose(out, ref, atol=2e-2, rtol=2e-2), "mismatch vs reference (case 1)"

    # --- Case 2: tiny shapes that require padding to lane-dense tiles.
    B2, in2, out2 = 8, 32, 64
    kx, kw, kb, key = jax.random.split(key, 4)
    bound2 = 1.0 / (in2 ** 0.5)
    x2 = jax.random.normal(kx, (B2, in2), dtype=jnp.float32)
    w2 = jax.random.uniform(kw, (out2, in2), jnp.float32, -bound2, bound2)
    b2 = jax.random.uniform(kb, (out2,), jnp.float32, -bound2, bound2)

    out2_v = jax.block_until_ready(dino_head(x2, w2, b2))
    ref2 = _reference(x2, w2, b2)
    assert out2_v.shape == (B2, out2)
    assert jnp.allclose(out2_v, ref2, atol=2e-2, rtol=2e-2), "mismatch vs reference (case 2)"

    print("KERNEL_OK")
</pallas_src>

<mosaic_0001>
module attributes {stable_mosaic.version = 11 : i64} {
  func.func @dino_head_kernel(%arg0: i32, %arg1: i32, %arg2: i32, %arg3: memref<8x128xf32, #tpu.memory_space<vmem>>, %arg4: memref<128x128xf32, #tpu.memory_space<vmem>>, %arg5: memref<1x128xf32, #tpu.memory_space<vmem>>, %arg6: memref<8x128xf32, #tpu.memory_space<vmem>>, %arg7: memref<8x128xf32, #tpu.memory_space<vmem>>) attributes {dimension_semantics = [#tpu.dimension_semantics<parallel>, #tpu.dimension_semantics<parallel>, #tpu.dimension_semantics<arbitrary>], iteration_bounds = array<i64: 2, 3, 2>, scalar_prefetch = 0 : i64, scratch_operands = 1 : i64, tpu.core_type = #tpu.core_type<tc>, window_params = [{transform_indices = @transform_0, window_bounds = array<i64: 8, 128>}, {transform_indices = @transform_1, window_bounds = array<i64: 128, 128>}, {transform_indices = @transform_2, window_bounds = array<i64: 1, 128>}, {transform_indices = @transform_3, window_bounds = array<i64: 8, 128>}]} {
    %c0_i32 = arith.constant 0 : i32
    %0 = arith.cmpi eq, %arg2, %c0_i32 : i32
    %1 = arith.extui %0 : i1 to i32
    %c0_i32_0 = arith.constant 0 : i32
    %2 = arith.cmpi ne, %1, %c0_i32_0 : i32
    scf.if %2 {
      %cst_10 = arith.constant 0.000000e+00 : f32
      %16 = vector.broadcast %cst_10 : f32 to vector<8x128xf32>
      %c0_11 = arith.constant 0 : index
      %c0_12 = arith.constant 0 : index
      %17 = vector.load %arg7[%c0_11, %c0_12] : memref<8x128xf32, #tpu.memory_space<vmem>>, vector<8x128xf32>
      tpu.vector_store %arg7[%c0_11, %c0_12], %16 {strides = array<i32>} : memref<8x128xf32, #tpu.memory_space<vmem>>, vector<8x128xf32>,
    } else {
    }
    %c0 = arith.constant 0 : index
    %c0_1 = arith.constant 0 : index
    %3 = vector.load %arg3[%c0, %c0_1] : memref<8x128xf32, #tpu.memory_space<vmem>>, vector<8x128xf32>
    %cst = arith.constant 0.000000e+00 : f32
    %4 = vector.broadcast %cst : f32 to vector<8x128xf32>
    %5 = arith.maximumf %3, %4 : vector<8x128xf32>
    %6 = arith.truncf %5 : vector<8x128xf32> to vector<8x128xbf16>
    %c0_2 = arith.constant 0 : index
    %c0_3 = arith.constant 0 : index
    %7 = vector.load %arg4[%c0_2, %c0_3] : memref<128x128xf32, #tpu.memory_space<vmem>>, vector<128x128xf32>
    %8 = arith.truncf %7 : vector<128x128xf32> to vector<128x128xbf16>
    %c0_4 = arith.constant 0 : index
    %c0_5 = arith.constant 0 : index
    %9 = vector.load %arg7[%c0_4, %c0_5] : memref<8x128xf32, #tpu.memory_space<vmem>>, vector<8x128xf32>
    %cst_6 = arith.constant dense<0.000000e+00> : vector<8x128xf32>
    %10 = tpu.matmul %6, %8, %cst_6 {dimension_numbers = #tpu.dot_dimension_numbers<[1], [1], [0], [0], [0, 0, 1, 0], [], []>} : vector<8x128xbf16>, vector<128x128xbf16>, vector<8x128xf32> -> vector<8x128xf32>
    %11 = arith.addf %9, %10 : vector<8x128xf32>
    %c0_7 = arith.constant 0 : index
    %c0_8 = arith.constant 0 : index
    %12 = vector.load %arg7[%c0_7, %c0_8] : memref<8x128xf32, #tpu.memory_space<vmem>>, vector<8x128xf32>
    tpu.vector_store %arg7[%c0_7, %c0_8], %11 {strides = array<i32>} : memref<8x128xf32, #tpu.memory_space<vmem>>, vector<8x128xf32>,
    %c1_i32 = arith.constant 1 : i32
    %13 = arith.cmpi eq, %arg2, %c1_i32 : i32
    %14 = arith.extui %13 : i1 to i32
    %c0_i32_9 = arith.constant 0 : i32
    %15 = arith.cmpi ne, %14, %c0_i32_9 : i32
    scf.if %15 {
      %c0_10 = arith.constant 0 : index
      %c0_11 = arith.constant 0 : index
      %16 = vector.load %arg7[%c0_10, %c0_11] : memref<8x128xf32, #tpu.memory_space<vmem>>, vector<8x128xf32>
      %c0_12 = arith.constant 0 : index
      %c0_13 = arith.constant 0 : index
      %17 = vector.load %arg5[%c0_12, %c0_13] : memref<1x128xf32, #tpu.memory_space<vmem>>, vector<1x128xf32>
      %18 = vector.broadcast %17 : vector<1x128xf32> to vector<8x128xf32>
      %19 = arith.addf %16, %18 : vector<8x128xf32>
      %c0_14 = arith.constant 0 : index
      %c0_15 = arith.constant 0 : index
      %20 = vector.load %arg6[%c0_14, %c0_15] : memref<8x128xf32, #tpu.memory_space<vmem>>, vector<8x128xf32>
      tpu.vector_store %arg6[%c0_14, %c0_15], %19 {strides = array<i32>} : memref<8x128xf32, #tpu.memory_space<vmem>>, vector<8x128xf32>,
    } else {
    }
    return
  }
  func.func @transform_0(%arg0: i32, %arg1: i32, %arg2: i32) -> (i32, i32) {
    %c0_i32 = arith.constant 0 : i32
    return %arg0, %arg2 : i32, i32
  }
  func.func @transform_1(%arg0: i32, %arg1: i32, %arg2: i32) -> (i32, i32) {
    %c0_i32 = arith.constant 0 : i32
    return %arg1, %arg2 : i32, i32
  }
  func.func @transform_2(%arg0: i32, %arg1: i32, %arg2: i32) -> (i32, i32) {
    %c0_i32 = arith.constant 0 : i32
    %c0_i32_0 = arith.constant 0 : i32
    return %c0_i32, %arg1 : i32, i32
  }
  func.func @transform_3(%arg0: i32, %arg1: i32, %arg2: i32) -> (i32, i32) {
    %c0_i32 = arith.constant 0 : i32
    return %arg0, %arg1 : i32, i32
  }
}

</mosaic_0001>

<bundles_post_ra>
// kernel: tpu_custom_call.1
= control target key start
LH: loop header
LB: loop body
LE: loop exit
PB: predicated region body
PF: predicated region fallthrough
CT: control target
= control target key end

     0   :  { %s1303_s0 = inlined_call_operand.hbm [shape: f32[16,256], index: 0, kind: input, shape index: {}]   ;;  %s1304_s1 = inlined_call_operand.hbm [shape: f32[384,256], index: 1, kind: input, shape index: {}]   ;;  %s1305_s2 = inlined_call_operand.vmem [shape: f32[1,384], index: 2, kind: input, shape index: {}]   ;;  %s1306_s3 = inlined_call_operand.hbm [shape: f32[16,384], index: 3, kind: output, shape index: {}]  }
   0x1   :  { %1320 = sst [smem:[#allocation23_spill]] %s1306_s3 }
   0x2   :  { %8 = vsyncpa [#allocation4], 0 }
   0x3   :  { %10 = vsyncpa [#allocation4 + $0x1], 0 }
   0x4   :  { %11 = vsyncpa [#allocation7], 0 }
   0x5   :  { %13 = vsyncpa [#allocation7 + $0x1], 0 }
   0x6   :  { %14 = vsyncpa [#allocation5], 0 }
   0x7   :  { %16 = vsyncpa [#allocation5 + $0x1], 0  ;;  %s958_s12 = smov 0   ;;  %s960_s13 = smov 0  }
   0x8   :  { %s962_s14 = smov 0   ;;  %s964_s15 = smov 0  }
   0x9   :  { %s966_s16 = smov 0   ;;  %s968_s17 = smov 0  }
   0xa   :  { %s970_s18 = smov 0   ;;  %s972_s19 = smov 0  }
   0xb   :  { %s974_s20 = smov 0   ;;  %s976_s21 = smov 0  }
   0xc   :  { %s978_s22 = smov 0   ;;  %s980_s23 = smov 0  }
   0xd   :  { %s982_s24 = smov 0   ;;  %s984_s25 = smov 0  }
   0xe   :  { %s986_s26 = smov 0   ;;  %s988_s27 = smov 0  }
   0xf LB: > { %1321 = sst [smem:[#allocation12_spill]] %s867_s12  ;;  %s1307_s28 = sadd.s32 4294967295, %s927_s27   ;;  %s927_s27 = sphi %s988_s27, %s22_s27   ;;  %s923_s26 = sphi %s986_s26, %s1373_s26   ;;  %s919_s25 = sphi %s984_s25, %s1372_s25   ;;  %s915_s24 = sphi %s982_s24, %s1371_s24   ;;  %s911_s23 = sphi %s980_s23, %s1370_s23   ;;  %s907_s22 = sphi %s978_s22, %s1369_s22   ;;  %s903_s21 = sphi %s976_s21, %s1368_s21   ;;  %s899_s20 = sphi %s974_s20, %s1367_s20   ;;  %s895_s19 = sphi %s972_s19, %s1366_s19   ;;  %s891_s18 = sphi %s970_s18, %s1365_s18   ;;  %s887_s17 = sphi %s968_s17, %s1364_s17   ;;  %s883_s16 = sphi %s966_s16, %s1363_s16   ;;  %s879_s15 = sphi %s964_s15, %s1362_s15   ;;  %s875_s14 = sphi %s962_s14, %s1353_s14   ;;  %s871_s13 = sphi %s960_s13, %s1361_s13   ;;  %s867_s12 = sphi %s958_s12, %s1360_s12  }
  0x10   : > { %1322 = sst [smem:[#allocation13_spill]] %s875_s14  ;;  %s34_s30 = sadd.s32 1, %s915_s24 }
  0x11   : > { %1323 = sst [smem:[#allocation14_spill]] %s899_s20  ;;  %s37_s4 = sadd.s32 1, %s919_s25 }
  0x12   : > { %p35_p0 = scmp.ge.s32.totalorder %s34_s30, 2  ;;  %s41_s5 = sadd.s32 1, %s923_s26 }
  0x13   : > { %s50_s6 = sadd.s32 1, %s899_s20  ;;  %p57_p1 = scmp.ne.s32.totalorder %s899_s20, %s895_s19 }
  0x14   : > { %s1375_s30 = smov (%p35_p0, %s34_s30), 0  ;;  %s1377_s4 = smov (!%p35_p0, %s37_s4), %s919_s25 }
  0x15   : > { %1324 = sst [smem:[#allocation15_spill]] %s1375_s30  ;;  %s46_s7 = ssub.s32 %s915_s24, %s1375_s30 }
  0x16   : > { %p58_p2 = scmp.eq.s32.totalorder %s927_s27, 0  ;;  %p39_p3 = scmp.ge.s32.totalorder %s1377_s4, 3 }
  0x17   : > { %p63_p4 = scmp.ne.s32.totalorder %s895_s19, %s891_s18  ;;  %p1059_p6 = scmp.eq.s32.totalorder %s1307_s28, 0 }
  0x18   : > { %p1053_p5 = por %p58_p2, %p57_p1  ;;  %s1379_s4 = smov (%p39_p3, %s1377_s4), 0 }
  0x19   : > { %1327 = sst [smem:[#allocation16_spill]] %s1379_s4  ;;  %s1381_s5 = smov (!%p39_p3, %s41_s5), %s923_s26 }
  0x1a   : > { %p1068_p7 = por %p1059_p6, %p63_p4  ;;  %s73_s11 = ssub.s32 %s919_s25, %s1379_s4 }
  0x1b   : > { %p43_p8 = scmp.ge.s32.totalorder %s1381_s5, 2  ;;  %s75_s18 = sor.u32 %s73_s11, %s46_s7 }
  0x1c   : > { %p76_p9 = scmp.eq.s32.totalorder %s75_s18, 0  ;;  %s78_s29 = sadd.s32 1, %s887_s17 }
  0x1d   : > { %s1383_s5 = smov (%p43_p8, %s1381_s5), 0  ;;  %p85_p10 = scmp.ne.s32.totalorder %s887_s17, %s883_s16 }
  0x1e   : > { %1329 = sst [smem:[#allocation17_spill]] %s1383_s5  ;;  %s45_s30 = ssub.s32 %s923_s26, %s1383_s5 }
  0x1f   : > { %s1078_s28 = scalar_select %p76_p9, %s887_s17, %s78_s29  }
  0x20   : > { %s47_s4 = sor.u32 %s46_s7, %s45_s30  ;;  %p91_p11 = scmp.ne.s32.totalorder %s883_s16, %s879_s15 }
  0x21   : > { %1330 = sst [smem:[#allocation18_spill]] %s1078_s28  ;;  %p48_p12 = scmp.eq.s32.totalorder %s47_s4, 0 }
  0x22   : > { %p1088_p13 = por %p85_p10, %p58_p2  ;;  %p1094_p0 = por %p91_p11, %p1059_p6 }
  0x23   : > { %s129_s5 = sor.u32 %s73_s11, %s45_s30  ;;  %s132_s7 = sadd.s32 1, %s875_s14 }
  0x24   : > { %s1332_s29 = scalar_select %p1094_p0, 1, 0 }
  0x25   : > { %s1099_s28 = scalar_select %p48_p12, %s899_s20, %s50_s6  }
  0x26   : > { %p130_p1 = scmp.eq.s32.totalorder %s129_s5, 0  ;;  %p142_p3 = scmp.ne.s32.totalorder %s875_s14, %s871_s13 }
  0x27   : > { %1333 = sst [smem:[#allocation19_spill]] %s1099_s28  ;;  %s1334_s15 = sadd.s32 4294967295, %s927_s27  }
  0x28   : > { %p143_p4 = scmp.eq.s32.totalorder %s1334_s15, 11  ;;  %p148_p6 = scmp.ne.s32.totalorder %s871_s13, %s867_s12 }
  0x29   : > { %s1107_s4 = scalar_select %p130_p1, %s875_s14, %s132_s7  }
  0x2a   : > { %p1109_p2 = por %p143_p4, %p142_p3  ;;  %s1338_s3 = sadd.s32 4294967294, %s927_s27  }
  0x2b   : > { %1335 = sst [smem:[#allocation20_spill]] %s1107_s4  ;;  %p149_p8 = scmp.eq.s32.totalorder %s1338_s3, 11 }
  0x2c   : > { %s1336_s9 = scalar_select %p1109_p2, 1, 0 }
  0x2d   : > { %p571_p9 = scmp.lt.s32.totalorder %s927_s27, 12  ;;  %s169_s30 = sand.u32 1, %s899_s20  }
  0x2e   : > { %1337 = sst [smem:[#allocation21_spill]] %s1336_s9  ;;  %p1119_p10 = por %p149_p8, %p148_p6 }
  0x2f   : > { %s505_s6 = sshll.u32 %s169_s30, 3  ;;  %s506_s11 = sshll.u32 %s923_s26, 1 }
  0x30   : > { %s1339_s5 = scalar_select %p1119_p10, 1, 0 }
  0x31   : > { %s178_s7 = sadd.s32 %s915_s24, %s506_s11  ;;  %s173_s28 = scalar_lea.vmem [#allocation3], %s505_s6 }
  0x32   : > { %1340 = sst [smem:[#allocation22_spill]] %s1339_s5  ;;  %s507_s15 = sshll.u32 %s178_s7, 7 }
  0x33   : > { %s182_s4 = sshll.u32 %s173_s28, 4  ;;  %s180_s12 = scalar_lea.hbm %s1303_s0, %s507_s15  ;;  %s183_s4 = int_to_ptr.vmem [resolvable:$true] %s182_s4 }
  0x34   : > { %p1132_p11 = pnand %p571_p9, %p1053_p5  ;;  %s523_s20 = sshll.u32 %s919_s25, 5 }
  0x35   : > { %s199_s5 = sadd.s32 %s915_s24, %s523_s20  ;;  %p1142_p12 = pnand %p571_p9, %p1088_p13 }
  0x36   : > { %p512_p1 = scmp.ge.s32.totalorder %s927_s27, 1  ;;  %s170_s28 = scalar_lea.sflag [#allocation4], %s169_s30 }
  0x37   : > { %p709_p3 = pneg %p1132_p11  ;;  %s720_s14 = scalar_lea.vmem %s183_s4, 128 }
  0x38   : > { %p721_p4 = scmp.ne.s32.totalorder %s183_s4, %s720_s14  ;;  %s929_s8 = smov [#allocation3]  }
  0x39   : > { %s725_s9 = sshll.u32 %s929_s8, 4  ;;  %s726_s9 = int_to_ptr.vmem [resolvable:$false] %s725_s9 }
  0x3a   : > { %p723_p6 = pnand %p721_p4, %p709_p3  ;;  %s727_s6 = scalar_lea.vmem %s726_s9, 256 }
  0x3b   : > { %p728_p8 = scmp.lt.s32.totalorder %s183_s4, %s726_s9  ;;  %p729_p10 = scmp.lt.s32.totalorder %s727_s6, %s720_s14 }
  0x3c   : > { %p724_p5 = pneg %p723_p6 }
  0x3d   : > { %p730_p2 = por %p729_p10, %p728_p8 }
  0x3f   : > { %p731_p0 = pnand %p730_p2, %p724_p5 }
  0x41   : > { %734 = shalt.err (!%p731_p0)
}
  0x42   : > { %563 = dma.hbm_to_vmem [thread:$0]  (!%p1132_p11), %s180_s12, 128, %s183_s4, %s170_s28  }
  0x43   : > { %p216_p13 = scmp.lt.s32.totalorder %s927_s27, 13  ;;  %s189_s20 = sand.u32 1, %s887_s17  }
  0x44   : > { %s511_s18 = sshll.u32 %s199_s5, 7  ;;  %s508_s7 = sshll.u32 %s189_s20, 7 }
  0x45   : > { %p1155_p9 = pnand %p512_p1, %p216_p13  ;;  %s201_s8 = scalar_lea.hbm %s1304_s1, %s511_s18 }
  0x46   : > { %s193_s9 = scalar_lea.vmem [#allocation6], %s508_s7  ;;  %s190_s6 = scalar_lea.sflag [#allocation7], %s189_s20 }
  0x47   : > { %s202_s3 = sshll.u32 %s193_s9, 4  ;;  %p737_p0 = pneg %p1142_p12  ;;  %s203_s3 = int_to_ptr.vmem [resolvable:$true] %s202_s3 }
  0x48   : > { %s748_s12 = scalar_lea.vmem %s203_s3, 2048  ;;  %s930_s4 = smov [#allocation6]  }
  0x49   : > { %p749_p2 = scmp.ne.s32.totalorder %s203_s3, %s748_s12  ;;  %s753_s5 = sshll.u32 %s930_s4, 4  ;;  %s754_s5 = int_to_ptr.vmem [resolvable:$false] %s753_s5 }
  0x4a   : > { %s755_s28 = scalar_lea.vmem %s754_s5, 4096  ;;  %p756_p1 = scmp.lt.s32.totalorder %s203_s3, %s754_s5 }
  0x4b   : > { %p751_p10 = pnand %p749_p2, %p737_p0  ;;  %p757_p3 = scmp.lt.s32.totalorder %s755_s28, %s748_s12 }
  0x4d   : > { %p752_p11 = pneg %p751_p10  ;;  %p758_p4 = por %p757_p3, %p756_p1 }
  0x4f   : > { %p759_p6 = pnand %p758_p4, %p752_p11 }
  0x51   : > { %762 = shalt.err (!%p759_p6)
}
  0x52   : > { %s931_s18 = smov 256   ;;  %s932_s7 = smov 128  }
  0x53   : > { %s933_s15 = smov 8   ;;  %220 = sbr.rel (%p1155_p9) target bundleno = 401 (0x191), region = 32 }
  0x54   : > { %566 = dma.hbm_to_vmem [thread:$0]  (!%p1142_p12), %s201_s8, 2048, %s203_s3, %s190_s6, %s931_s18, %s932_s7, %s933_s15  }
  0x55   : > { %s222_s20 = sand.u32 (!%p1155_p9), 1, %s895_s19  }
  0x56   : > { %s1169_s14 = sshll.u32 (!%p1155_p9), %s222_s20, 3  ;;  %s223_s9 = scalar_lea.sflag (!%p1155_p9), [#allocation4], %s222_s20 }
  0x57   : > { %s226_s12 = scalar_lea.vmem (!%p1155_p9), [#allocation3], %s1169_s14 }
  0x58   : > { %854 = dma.done.wait (%p1068_p7), %s223_s9, 128  }
  0x59   : > { %856 = vsyncadd (%p1068_p7), %s223_s9, 4294967168  ;;  %s231_s11 = sand.u32 1, %s883_s16   ;;  %p1344_p12 = scmp.ne.s32.totalorder %s1332_s29, 0 }
  0x5a   : > { %s514_s8 = sshll.u32 %s231_s11, 7  ;;  %s232_s3 = scalar_lea.sflag [#allocation7], %s231_s11 }
  0x5b   : > { %s1177_s30 = scalar_lea.vmem [#allocation6], %s514_s8 }
  0x5c   : > { %858 = dma.done.wait (%p1344_p12), %s232_s3, 2048  }
  0x5d   : > { %860 = vsyncadd (%p1344_p12), %s232_s3, 4294965248  ;;  %s263_s6 = sand.u32 1, %s871_s13   ;;  %p267_p5 = scmp.lt.s32.totalorder %s907_s22, 2 }
  0x5e   : > { %s1187_s10 = sshll.u32 %s263_s6, 3  ;;  %p516_p7 = scmp.ne.s32.totalorder %s903_s21, 0 }
  0x5f   : > { %s1190_s4 = scalar_select %p267_p5, %s907_s22, 2 }
  0x60   : > { %s265_s7 = scalar_lea.vmem [#allocation8], %s1187_s10  ;;  %274 = sbr.rel (%p516_p7) target bundleno = 103 (0x67), region = 44 }
  0x61   : > { %s269_s18 = scalar_lea.vmem %s1305_s2, %s1190_s4 }
  0x65   : > { %v934_v0 = vmov 0.0  }
  0x66   : > { %275 = vst [vmem:[#allocation2] sm:$0xff] %v934_v0 }
  0x67 PF: > { %v293_v1 = vld [vmem:[%s1177_s30 + $0x70] sm:$0xff]  ;;  %v294_v2 = vld [vmem:[%s1177_s30 + $0x78] sm:$0xff]  ;;  %v935_v3 = vmov 0.0   ;;  %vm936_vm0 = vmmov 0   ;;  %v291_v5 = vld [vmem:[%s1177_s30 + $0x60] sm:$0xff]  ;;  %p517_p8 = scmp.ne.s32.totalorder %s903_s21, 1 }
  0x68   : > { %533 = vmatprep.subr.bf16.mxu0 %v935_v3  ;;  %v302_v4 = vpack.c.bf16 %v294_v2, %v293_v1  ;;  %549 = vmatprep.mubr.msk.bf16.mxu0 %vm936_vm0, %v935_v3  ;;  %v292_v6 = vld [vmem:[%s1177_s30 + $0x68] sm:$0xff]  ;;  %v289_v8 = vld [vmem:[%s1177_s30 + $0x50] sm:$0xff]  ;;  %v290_v9 = vld [vmem:[%s1177_s30 + $0x58] sm:$0xff] }
  0x69   : > { %v301_v7 = vpack.c.bf16 %v292_v6, %v291_v5  ;;  %v300_v10 = vpack.c.bf16 %v290_v9, %v289_v8  ;;  %v287_v11 = vld [vmem:[%s1177_s30 + $0x40] sm:$0xff]  ;;  %v288_v12 = vld [vmem:[%s1177_s30 + $0x48] sm:$0xff]  ;;  %v285_v14 = vld [vmem:[%s1177_s30 + $0x30] sm:$0xff] }
  0x6a   : > { %534 = vmatpush3.bf16.xpose.msra.mxu0 %v302_v4  ;;  %v299_v13 = vpack.c.bf16 %v288_v12, %v287_v11  ;;  %v286_v15 = vld [vmem:[%s1177_s30 + $0x38] sm:$0xff]  ;;  %v283_v17 = vld [vmem:[%s1177_s30 + $0x20] sm:$0xff]  ;;  %v284_v18 = vld [vmem:[%s1177_s30 + $0x28] sm:$0xff] }
  0x6b   : > { %535 = vmatprep.subr.bf16.mxu0 %v935_v3  ;;  %v298_v16 = vpack.c.bf16 %v286_v15, %v285_v14  ;;  %v297_v19 = vpack.c.bf16 %v284_v18, %v283_v17  ;;  %v281_v20 = vld [vmem:[%s1177_s30 + $0x10] sm:$0xff]  ;;  %v282_v21 = vld [vmem:[%s1177_s30 + $0x18] sm:$0xff]  ;;  %v279_v23 = vld [vmem:[%s1177_s30] sm:$0xff] }
  0x6c   : > { %v296_v22 = vpack.c.bf16 %v282_v21, %v281_v20  ;;  %v280_v24 = vld [vmem:[%s1177_s30 + $0x8] sm:$0xff]  ;;  %v276_v26 = vld [vmem:[%s226_s12] sm:$0xff] }
  0x6d   : > { %v295_v25 = vpack.c.bf16 %v280_v24, %v279_v23  ;;  %v277_v27 = vmax.f32 %v276_v26, 0.0  ;;  %v303_v29 = vld [vmem:[#allocation2] sm:$0xff] }
  0x6f   : > { %v278_v28 = vpack.c.bf16 %v277_v27, %v277_v27 }
  0x72   : > { %536 = vmatpush3.bf16.xpose.msra.mxu0 %v301_v7 }
  0x73   : > { %537 = vmatprep.subr.bf16.mxu0 %v935_v3 }
  0x7a   : > { %538 = vmatpush3.bf16.xpose.msra.mxu0 %v300_v10 }
  0x7b   : > { %539 = vmatprep.subr.bf16.mxu0 %v935_v3 }
  0x82   : > { %540 = vmatpush3.bf16.xpose.msra.mxu0 %v299_v13 }
  0x83   : > { %541 = vmatprep.subr.bf16.mxu0 %v935_v3 }
  0x8a   : > { %542 = vmatpush3.bf16.xpose.msra.mxu0 %v298_v16 }
  0x8b   : > { %543 = vmatprep.subr.bf16.mxu0 %v935_v3 }
  0x92   : > { %544 = vmatpush3.bf16.xpose.msra.mxu0 %v297_v19 }
  0x93   : > { %545 = vmatprep.subr.bf16.mxu0 %v935_v3 }
  0x9a   : > { %546 = vmatpush3.bf16.xpose.msra.mxu0 %v296_v22 }
  0x9b   : > { %547 = vmatprep.subr.bf16.mxu0 %v935_v3 }
  0xa2   : > { %548 = vmatpush3.bf16.xpose.msra.mxu0 %v295_v25 }
  0xa9   : > { %550 = vmatmul.mubr.bf16.vlgmr.msra.gmra.mxu0 %v278_v28 }
 0x169   : > { %v338_v30 = vpop.f32.mrf.mxu0 }
 0x16a   : > { %v344_v31 = vadd.f32 %v338_v30, %v303_v29 }
 0x16b   : > { %v551_v32 = vpop.f32.mrf.mxu0  ;;  %349 = sbr.rel (%p517_p8) target bundleno = 375 (0x177), region = 48 }
 0x16c   : > { %345 = vst [vmem:[#allocation2] sm:$0xff] %v344_v31 }
 0x16d   : > { %v341_v33 = vpop.f32.mrf.mxu0 }
 0x16f   : > { %v552_v34 = vpop.f32.mrf.mxu0 }
 0x170   : > { %v518_v36 = vld [vmem:[%s269_s18] ss:$0 sm:$0xff] }
 0x173   : > { %v350_v35 = vld [vmem:[#allocation2] sm:$0xff] }
 0x174   : > { %v358_v37 = vadd.f32 %v518_v36, %v350_v35 }
 0x176   : > { %359 = vst [vmem:[%s265_s7] sm:$0xff] %v358_v37 }
 0x177 PF: > { %s1345_s20 = sld [smem:[#allocation21_spill]]  ;;  %s553_s14 = smul.u32 3, %s911_s23 }
 0x178   : > { %s376_s21 = sshll.u32 %s265_s7, 4  ;;  %s1346_s3 = sld [smem:[#allocation23_spill]]  ;;  %s377_s21 = int_to_ptr.vmem [resolvable:$true] %s376_s21 }
 0x179   : > { %s372_s9 = sadd.s32 %s907_s22, %s553_s14  ;;  %s361_s4 = scalar_lea.sflag [#allocation5], %s263_s6 }
 0x17a   : > { %s520_s12 = sshll.u32 %s372_s9, 7  ;;  %s763_s5 = scalar_lea.vmem %s377_s21, 128 }
 0x17b   : > { %p764_p13 = scmp.ne.s32.totalorder %s377_s21, %s763_s5  ;;  %s937_s28 = smov [#allocation8]  }
 0x17c   : > { %s767_s18 = sshll.u32 %s937_s28, 4  ;;  %s768_s18 = int_to_ptr.vmem [resolvable:$false] %s767_s18 }
 0x17d   : > { %p1347_p9 = scmp.ne.s32.totalorder %s1345_s20, 0  ;;  %s769_s23 = scalar_lea.vmem %s768_s18, 256 }
 0x17e   : > { %s374_s30 = scalar_lea.hbm %s1346_s3, %s520_s12  ;;  %p770_p10 = scmp.lt.s32.totalorder %s377_s21, %s768_s18 }
 0x17f   : > { %p765_p0 = pnand %p764_p13, %p1347_p9  ;;  %p771_p11 = scmp.lt.s32.totalorder %s769_s23, %s763_s5 }
 0x181   : > { %p766_p2 = pneg %p765_p0  ;;  %p772_p1 = por %p771_p11, %p770_p10 }
 0x183   : > { %p773_p3 = pnand %p772_p1, %p766_p2 }
 0x185   : > { %776 = shalt.err (!%p773_p3)
}
 0x186   : > { %s777_s22 = scalar_lea.hbm %s374_s30, 128  ;;  %s781_s7 = scalar_lea.hbm %s1346_s3, 768 }
 0x187   : > { %p778_p4 = scmp.ne.s32.totalorder %s374_s30, %s777_s22  ;;  %p782_p5 = scmp.lt.s32.totalorder %s374_s30, %s1346_s3 }
 0x188   : > { %p783_p7 = scmp.lt.s32.totalorder %s781_s7, %s777_s22 }
 0x189   : > { %p779_p6 = pnand %p778_p4, %p1347_p9 }
 0x18a   : > { %p784_p8 = por %p783_p7, %p782_p5 }
 0x18b   : > { %p780_p12 = pneg %p779_p6 }
 0x18d   : > { %p785_p13 = pnand %p784_p8, %p780_p12 }
 0x18f   : > { %788 = shalt.err (!%p785_p13)
}
 0x190   : > { %558 = dma.vmem_to_hbm [thread:$0]  (%p1347_p9), %s377_s21, 128, %s374_s30, %s361_s4  }
 0x191 PF: > { %s1348_s14 = sld [smem:[#allocation12_spill]]  ;;  %p572_p0 = scmp.ge.s32.totalorder %s927_s27, 2 }
 0x192   : > { %s1349_s9 = sld [smem:[#allocation22_spill]] }
 0x197   : > { %s388_s12 = sand.u32 1, %s1348_s14  }
 0x198   : > { %p1350_p2 = scmp.ne.s32.totalorder %s1349_s9, 0  ;;  %s389_s11 = scalar_lea.sflag [#allocation5], %s388_s12 }
 0x19a   : > { %p568_p10 = pnand %p572_p0, %p1350_p2 }
 0x19c   : > { %p569_p11 = pneg %p568_p10 }
 0x19e   : > { %862 = dma.done.wait (%p569_p11), %s389_s11, 128  }
 0x19f   : > { %864 = vsyncadd (%p569_p11), %s389_s11, 4294967168  ;;  %s22_s27 = sadd.s32 1, %s927_s27   ;;  %s1352_s20 = sld [smem:[#allocation13_spill]] }
 0x1a0   : > { %p1250_p1 = scmp.ge.s32.totalorder %s22_s27, 14   ;;  %s1353_s14 = sld [smem:[#allocation20_spill]] }
 0x1a1   : > { %s1354_s21 = sld [smem:[#allocation18_spill]]  ;;  %s1360_s12 = smov %s871_s13 }
 0x1a2   : > { %s1355_s30 = sld [smem:[#allocation14_spill]]  ;;  %s1362_s15 = smov %s883_s16 }
 0x1a3   : > { %s1356_s4 = sld [smem:[#allocation19_spill]]  ;;  %s1363_s16 = smov %s887_s17 }
 0x1a4   : > { %s1357_s5 = sld [smem:[#allocation15_spill]]  ;;  %s1365_s18 = smov %s895_s19 }
 0x1a5   : > { %s1358_s28 = sld [smem:[#allocation16_spill]]  ;;  %s1361_s13 = smov %s1352_s20 }
 0x1a6   : > { %s1359_s6 = sld [smem:[#allocation17_spill]]  ;;  %s1369_s22 = smov %s919_s25 }
 0x1a7   : > { %s1364_s17 = smov %s1354_s21  ;;  %s1368_s21 = smov %s915_s24 }
 0x1a8   : > { %s1366_s19 = smov %s1355_s30  ;;  %s1370_s23 = smov %s923_s26 }
 0x1a9   : > { %s1367_s20 = smov %s1356_s4  ;;  %21 = sbr.rel (!%p1250_p1) target bundleno = 15 (0xf), region = 101 }
 0x1aa   : > { %s1371_s24 = smov %s1357_s5 }
 0x1ab   : > { %s1372_s25 = smov %s1358_s28 }
 0x1ac   : > { %s1373_s26 = smov %s1359_s6 }
 0x1ae   :  { %394 = vsyncpa [#allocation4], 1 }
 0x1af   :  { %396 = vsyncpa [#allocation4 + $0x1], 1 }
 0x1b0   :  { %397 = vsyncpa [#allocation7], 1 }
 0x1b1   :  { %399 = vsyncpa [#allocation7 + $0x1], 1 }
 0x1b2   :  { %400 = vsyncpa [#allocation5], 1 }
 0x1b3   :  { %402 = vsyncpa [#allocation5 + $0x1], 1 }

</bundles_post_ra>
